<compile_context>
chip_gen: v7x
topology: tpu7x:2x2x1
jax: 0.10.0
libtpu: 0.0.40
codegen_flags: <defaults>
</compile_context>

<pallas_src>
import functools

import jax
import jax.numpy as jnp
from jax import lax
from jax.experimental import pallas as pl
from jax.experimental.pallas import tpu as pltpu

NEG_BIG = -1e10
LEAKY_SLOPE = 0.2

# Static Python unroll of the per-block batch loop up to this many elements;
# above it a lax.fori_loop bounds live ranges (vreg pressure) per element.
_BATCH_UNROLL = 2


def _fast_recip(x):
    """EUP approximate reciprocal + one Newton refinement step.

    Moves divides off the VPU path while keeping ~f32 accuracy (so the 1e-4
    comparison tolerance against the pure-JAX reference still holds)."""
    r = pl.reciprocal(x, approx=True)
    return r * (2.0 - x * r)


def _wlhga_kernel(nodes_ref, adj_ref, adj_t_ref, w1h_ref, w2h_ref, wa_ref,
                  nodes_out_ref, edge_out_ref, *, step, bt, use_bf16_agg):
    w1h = w1h_ref[...]            # [1, H] (VMEM)
    w2h = w2h_ref[...]            # [1, H] (VMEM)
    w1a = wa_ref[0]               # scalar (packed SMEM f32[2])
    w2a = wa_ref[1]

    def leaky(x):
        return jnp.where(x >= 0.0, x, LEAKY_SLOPE * x)

    def masked_softmax(pre, mask0):
        # masked_fill semantics (exact parity with the PyTorch module,
        # including the all-masked-row -> uniform case).
        logits = jnp.where(mask0, NEG_BIG, pre)
        logits = logits - jnp.max(logits, axis=-1, keepdims=True)
        p = jnp.exp(logits)
        return p * _fast_recip(jnp.sum(p, axis=-1, keepdims=True))

    def mm_f32(a, b, dims):
        # Contraction on the last dims maps onto the MXU transposed-RHS path;
        # no explicit LHS relayout is issued inside the step loop.
        return lax.dot_general(a, b, dimension_numbers=(dims, ((), ())),
                               preferred_element_type=jnp.float32)

    def mm_agg(a, b, dims):
        # Post-softmax aggregation matmuls only: optional bf16 inputs with f32
        # accumulation. Logit matmuls always stay f32 for 1e-4 parity.
        if use_bf16_agg:
            a = a.astype(jnp.bfloat16)
            b = b.astype(jnp.bfloat16)
        return lax.dot_general(a, b, dimension_numbers=(dims, ((), ())),
                               preferred_element_type=jnp.float32)

    def one_batch(b):
        nodes = nodes_ref[b]      # [N, H]
        adj = adj_ref[b]          # [E, N]
        adj_t = adj_t_ref[b]      # [N, E] pre-transposed in HBM (no XLU work)

        # ---- loop-invariant precompute (hoisted out of the step loop) ----
        # If vreg spills appear at larger shapes, drop the hoisted masks
        # (recompute `== 0` inline per step) and keep only the biases hoisted.
        mask0_a = adj == 0.0                                      # [E, N]
        mask0_b = adj_t == 0.0                                    # [N, E]
        bias_a = w1a * adj                                        # [E, N]
        bias_b = w2a * adj_t                                      # [N, E]

        # edge_hidden init: degree-normalized sum of incident node features.
        deg = jnp.sum(adj, axis=-1, keepdims=True)                # [E, 1]
        deg = jnp.where(deg == 0.0, jnp.ones_like(deg), deg)
        edge = mm_f32(adj, nodes, ((1,), (0,))) * _fast_recip(deg)  # [E, H]

        # `step` is a static Python int -> unrolled agg_cell iterations.
        for _ in range(step):
            # node -> edge attention:
            #   q1([edge*node, adj]) == (edge*w1h) . nodes (over H) + w1a*adj
            alpha_pre = leaky(mm_f32(edge * w1h, nodes, ((1,), (1,))) + bias_a)
            alpha = masked_softmax(alpha_pre, mask0_a)            # [E, N]
            edge_new = mm_agg(alpha, nodes, ((1,), (0,)))         # [E, H]

            # edge -> node attention (contracts on last dims, no transposes
            # inside the step loop).
            beta_pre = leaky(
                mm_f32(nodes * w2h, edge_new, ((1,), (1,))) + bias_b)
            beta = masked_softmax(beta_pre, mask0_b)              # [N, E]
            nodes_new = mm_agg(beta, edge_new, ((1,), (0,)))      # [N, H]

            nodes = nodes_new
            edge = edge_new

        nodes_out_ref[b] = nodes.astype(nodes_out_ref.dtype)
        edge_out_ref[b] = edge.astype(edge_out_ref.dtype)

    if bt <= _BATCH_UNROLL:
        for b in range(bt):
            one_batch(b)
    else:
        # fori_loop bounds per-element live ranges (no simultaneous masks /
        # biases / attention temporaries for every b of the block).
        def body(b, carry):
            one_batch(b)
            return carry
        lax.fori_loop(0, bt, body, 0)


def _round_up(x, m):
    return ((x + m - 1) // m) * m


def _block_vmem_bytes(bt, N, E, H, itemsize=4):
    """Padded (8,128)-tiled VMEM footprint of one grid block: double-buffered
    pipeline blocks (in + out) plus a rough bound on in-body intermediates."""
    nodes_in = bt * _round_up(N, 8) * _round_up(H, 128)
    adj_in = bt * _round_up(E, 8) * _round_up(N, 128)
    adjt_in = bt * _round_up(N, 8) * _round_up(E, 128)
    nodes_out = bt * _round_up(N, 8) * _round_up(H, 128)
    edge_out = bt * _round_up(E, 8) * _round_up(H, 128)
    pipeline = 2 * (nodes_in + adj_in + adjt_in + nodes_out + edge_out)
    # alpha/beta/bias/mask/edge/node temporaries live per batch element.
    interm = 8 * (_round_up(E, 8) * _round_up(N, 128)
                  + _round_up(N, 8) * _round_up(E, 128)
                  + _round_up(E, 8) * _round_up(H, 128)
                  + _round_up(N, 8) * _round_up(H, 128))
    return (pipeline + interm) * itemsize


def _choose_batch_tile(B, N, E, H, budget_bytes=12 << 20):
    """Batch-tile heuristic (VMEM-budget and pipelining aware).

    - keep >= min(4, B) grid steps so BlockSpec double-buffering can overlap
      HBM DMA with compute (never a single whole-batch block for large B),
    - keep the *padded*, double-buffered block footprint under a budget that
      is safe on every generation (v5e 16 MiB scoped default, v7x 64 MiB VMEM),
    - prefer an even grid count so v7x megacore can shard the parallel axis.
    """
    max_bt = max(1, B // min(4, B))
    fitting = [bt for bt in range(1, max_bt + 1)
               if B % bt == 0 and _block_vmem_bytes(bt, N, E, H) <= budget_bytes]
    if not fitting:
        return 1
    even_grid = [bt for bt in fitting if (B // bt) % 2 == 0]
    return max(even_grid) if even_grid else max(fitting)


def wlhga_conv_weight(nodes_hidden, hn_adj, q1_weight, q2_weight, *, step,
                      batch_tile=None, use_bf16_agg=False):
    """nodes_hidden: [B,N,H] f32, hn_adj: [B,E,N] f32, q?_weight: [1,H+1] f32."""
    B, N, H = nodes_hidden.shape
    _, E, _ = hn_adj.shape

    if batch_tile is None:
        batch_tile = _choose_batch_tile(B, N, E, H)
    bt = batch_tile
    if bt < 1 or B % bt != 0:
        bt = 1
    grid_b = B // bt

    # Pre-transposed adjacency computed once by XLA in HBM; the pipeline hides
    # its DMA and the kernel no longer spends XLU cycles transposing per b.
    hn_adj_t = jnp.swapaxes(hn_adj, 1, 2)                         # [B, N, E]

    # Split Linear(H+1, 1) weights into feature part and adjacency-scalar part.
    w1h = q1_weight[:, :H].reshape(1, H)
    w2h = q2_weight[:, :H].reshape(1, H)
    # Both adjacency scalars packed into a single 1-D SMEM f32[2] (two (1,1)
    # 2-D SMEM blocks would each pad to 8x128 words).
    wa = jnp.stack([q1_weight[0, H], q2_weight[0, H]])

    # Scoped-VMEM limit derived from the padded block footprint (+ margin),
    # floored at the smallest per-generation default and capped well under
    # v7x's 64 MiB physical VMEM.
    vmem_limit = int(min(max(2 * _block_vmem_bytes(bt, N, E, H) + (2 << 20),
                             16 << 20), 48 << 20))

    kernel = functools.partial(_wlhga_kernel, step=step, bt=bt,
                               use_bf16_agg=use_bf16_agg)

    nodes_out, edge_out = pl.pallas_call(
        kernel,
        out_shape=(
            jax.ShapeDtypeStruct((B, N, H), nodes_hidden.dtype),
            jax.ShapeDtypeStruct((B, E, H), nodes_hidden.dtype),
        ),
        grid_spec=pltpu.PrefetchScalarGridSpec(
            num_scalar_prefetch=0,
            grid=(grid_b,),
            in_specs=[
                pl.BlockSpec((bt, N, H), lambda g: (g, 0, 0)),
                pl.BlockSpec((bt, E, N), lambda g: (g, 0, 0)),
                pl.BlockSpec((bt, N, E), lambda g: (g, 0, 0)),
                pl.BlockSpec((1, H), lambda g: (0, 0)),
                pl.BlockSpec((1, H), lambda g: (0, 0)),
                pl.BlockSpec((2,), lambda g: (0,),
                             memory_space=pltpu.SMEM),
            ],
            out_specs=[
                pl.BlockSpec((bt, N, H), lambda g: (g, 0, 0)),
                pl.BlockSpec((bt, E, H), lambda g: (g, 0, 0)),
            ],
        ),
        compiler_params=pltpu.CompilerParams(
            dimension_semantics=("parallel",),
            vmem_limit_bytes=vmem_limit),
    )(nodes_hidden, hn_adj, hn_adj_t, w1h, w2h, wa)
    return nodes_out, edge_out


def _reference(nodes_hidden, hn_adj, q1_weight, q2_weight, *, step):
    """Pure-JAX reference mirroring the PyTorch module (eval mode)."""
    deg = jnp.sum(hn_adj, axis=-1, keepdims=True)
    deg = jnp.where(deg == 0.0, jnp.ones_like(deg), deg)
    edge = jnp.einsum('ben,bnh->beh', hn_adj, nodes_hidden) / deg
    nodes = nodes_hidden

    def leaky(x):
        return jnp.where(x >= 0.0, x, LEAKY_SLOPE * x)

    for _ in range(step):
        prod = edge[:, :, None, :] * nodes[:, None, :, :]             # [B,E,N,H]
        ele = jnp.concatenate([prod, hn_adj[..., None]], axis=-1)     # [B,E,N,H+1]
        alpha = leaky(jnp.einsum('benk,ok->beno', ele, q1_weight))[..., 0]
        alpha = jnp.where(hn_adj == 0.0, NEG_BIG, alpha)
        alpha = jax.nn.softmax(alpha, axis=-1)
        edge_new = jnp.einsum('ben,bnh->beh', alpha, nodes)

        adj_t = jnp.swapaxes(hn_adj, 1, 2)
        prod2 = edge_new[:, None, :, :] * nodes[:, :, None, :]        # [B,N,E,H]
        ele2 = jnp.concatenate([prod2, adj_t[..., None]], axis=-1)
        beta = leaky(jnp.einsum('bnek,ok->bneo', ele2, q2_weight))[..., 0]
        beta = jnp.where(adj_t == 0.0, NEG_BIG, beta)
        beta = jax.nn.softmax(beta, axis=-1)
        nodes_new = jnp.einsum('bne,beh->bnh', beta, edge_new)

        nodes, edge = nodes_new, edge_new
    return nodes, edge


if __name__ == "__main__":
    B, N, E, H = 2, 16, 8, 32
    STEP = 2

    key = jax.random.PRNGKey(0)
    k_nodes, k_adj, k_w1, k_w2 = jax.random.split(key, 4)

    nodes_hidden = jax.random.normal(k_nodes, (B, N, H), dtype=jnp.float32)
    # Binary incidence matrix (hyperedge x node), float like the PyTorch code.
    hn_adj = (jax.random.uniform(k_adj, (B, E, N)) > 0.5).astype(jnp.float32)

    # Deterministic q1/q2 weights: Linear(H+1, 1, bias=False) -> shape (1, H+1).
    bound = 1.0 / jnp.sqrt(H + 1.0)
    q1_weight = jax.random.uniform(k_w1, (1, H + 1), minval=-bound, maxval=bound)
    q2_weight = jax.random.uniform(k_w2, (1, H + 1), minval=-bound, maxval=bound)

    nodes_out, edge_out = wlhga_conv_weight(
        nodes_hidden, hn_adj, q1_weight, q2_weight, step=STEP)
    nodes_out = jax.block_until_ready(nodes_out)
    edge_out = jax.block_until_ready(edge_out)

    nodes_ref, edge_ref = _reference(
        nodes_hidden, hn_adj, q1_weight, q2_weight, step=STEP)

    assert nodes_out.shape == (B, N, H) and edge_out.shape == (B, E, H)
    assert jnp.allclose(nodes_out, nodes_ref, atol=1e-4, rtol=1e-4)
    assert jnp.allclose(edge_out, edge_ref, atol=1e-4, rtol=1e-4)

    print("KERNEL_OK")
</pallas_src>

<mosaic_0001>
module attributes {stable_mosaic.version = 11 : i64} {
  func.func @_wlhga_kernel(%arg0: i32, %arg1: memref<1x16x32xf32, #tpu.memory_space<vmem>>, %arg2: memref<1x8x16xf32, #tpu.memory_space<vmem>>, %arg3: memref<1x16x8xf32, #tpu.memory_space<vmem>>, %arg4: memref<1x32xf32, #tpu.memory_space<vmem>>, %arg5: memref<1x32xf32, #tpu.memory_space<vmem>>, %arg6: memref<2xf32, #tpu.memory_space<smem>>, %arg7: memref<1x16x32xf32, #tpu.memory_space<vmem>>, %arg8: memref<1x8x32xf32, #tpu.memory_space<vmem>>) attributes {dimension_semantics = [#tpu.dimension_semantics<parallel>], iteration_bounds = array<i64: 2>, scalar_prefetch = 0 : i64, scratch_operands = 0 : i64, tpu.core_type = #tpu.core_type<tc>, window_params = [{transform_indices = @transform_0, window_bounds = array<i64: 1, 16, 32>}, {transform_indices = @transform_1, window_bounds = array<i64: 1, 8, 16>}, {transform_indices = @transform_2, window_bounds = array<i64: 1, 16, 8>}, {pipeline_mode = #tpu.pipeline_mode<synchronous>, transform_indices = @transform_3, window_bounds = array<i64: 1, 32>}, {pipeline_mode = #tpu.pipeline_mode<synchronous>, transform_indices = @transform_4, window_bounds = array<i64: 1, 32>}, {transform_indices = @transform_5, window_bounds = array<i64: 2>}, {transform_indices = @transform_6, window_bounds = array<i64: 1, 16, 32>}, {transform_indices = @transform_7, window_bounds = array<i64: 1, 8, 32>}]} {
    %c0 = arith.constant 0 : index
    %c0_0 = arith.constant 0 : index
    %0 = vector.load %arg4[%c0, %c0_0] : memref<1x32xf32, #tpu.memory_space<vmem>>, vector<1x32xf32>
    %c0_1 = arith.constant 0 : index
    %c0_2 = arith.constant 0 : index
    %1 = vector.load %arg5[%c0_1, %c0_2] : memref<1x32xf32, #tpu.memory_space<vmem>>, vector<1x32xf32>
    %c0_3 = arith.constant 0 : index
    %2 = memref.load %arg6[%c0_3] : memref<2xf32, #tpu.memory_space<smem>>
    %c1 = arith.constant 1 : index
    %3 = memref.load %arg6[%c1] : memref<2xf32, #tpu.memory_space<smem>>
    %c0_4 = arith.constant 0 : index
    %c0_5 = arith.constant 0 : index
    %c0_6 = arith.constant 0 : index
    %4 = vector.load %arg1[%c0_4, %c0_5, %c0_6] : memref<1x16x32xf32, #tpu.memory_space<vmem>>, vector<1x16x32xf32>
    %5 = vector.shape_cast %4 : vector<1x16x32xf32> to vector<16x32xf32>
    %c0_7 = arith.constant 0 : index
    %c0_8 = arith.constant 0 : index
    %c0_9 = arith.constant 0 : index
    %6 = vector.load %arg2[%c0_7, %c0_8, %c0_9] : memref<1x8x16xf32, #tpu.memory_space<vmem>>, vector<1x8x16xf32>
    %7 = vector.shape_cast %6 : vector<1x8x16xf32> to vector<8x16xf32>
    %c0_10 = arith.constant 0 : index
    %c0_11 = arith.constant 0 : index
    %c0_12 = arith.constant 0 : index
    %8 = vector.load %arg3[%c0_10, %c0_11, %c0_12] : memref<1x16x8xf32, #tpu.memory_space<vmem>>, vector<1x16x8xf32>
    %9 = vector.shape_cast %8 : vector<1x16x8xf32> to vector<16x8xf32>
    %cst = arith.constant 0.000000e+00 : f32
    %10 = vector.broadcast %cst : f32 to vector<8x16xf32>
    %11 = arith.cmpf oeq, %7, %10 : vector<8x16xf32>
    %cst_13 = arith.constant 0.000000e+00 : f32
    %12 = vector.broadcast %cst_13 : f32 to vector<16x8xf32>
    %13 = arith.cmpf oeq, %9, %12 : vector<16x8xf32>
    %14 = vector.broadcast %2 : f32 to vector<8x16xf32>
    %15 = arith.mulf %14, %7 : vector<8x16xf32>
    %16 = vector.broadcast %3 : f32 to vector<16x8xf32>
    %17 = arith.mulf %16, %9 : vector<16x8xf32>
    %cst_14 = arith.constant dense<0.000000e+00> : vector<8xf32>
    %18 = vector.multi_reduction <add>, %7, %cst_14 [1] : vector<8x16xf32> to vector<8xf32>
    %19 = vector.shape_cast %18 : vector<8xf32> to vector<8x1xf32>
    %cst_15 = arith.constant 0.000000e+00 : f32
    %20 = vector.broadcast %cst_15 : f32 to vector<8x1xf32>
    %21 = arith.cmpf oeq, %19, %20 : vector<8x1xf32>
    %cst_16 = arith.constant 1.000000e+00 : f32
    %22 = vector.broadcast %cst_16 : f32 to vector<8x1xf32>
    %23 = arith.select %21, %22, %19 : vector<8x1xi1>, vector<8x1xf32>
    %cst_17 = arith.constant dense<0.000000e+00> : vector<8x32xf32>
    %24 = tpu.matmul %7, %5, %cst_17 {dimension_numbers = #tpu.dot_dimension_numbers<[1], [0], [0], [1], [0, 0, 1, 1], [], []>} : vector<8x16xf32>, vector<16x32xf32>, vector<8x32xf32> -> vector<8x32xf32>
    %25 = tpu.reciprocal %23 {approx = true} : vector<8x1xf32> -> vector<8x1xf32>
    %26 = arith.mulf %23, %25 : vector<8x1xf32>
    %cst_18 = arith.constant 2.000000e+00 : f32
    %27 = vector.broadcast %cst_18 : f32 to vector<8x1xf32>
    %28 = arith.subf %27, %26 : vector<8x1xf32>
    %29 = arith.mulf %25, %28 : vector<8x1xf32>
    %30 = vector.broadcast %29 : vector<8x1xf32> to vector<8x32xf32>
    %31 = arith.mulf %24, %30 : vector<8x32xf32>
    %32 = vector.broadcast %0 : vector<1x32xf32> to vector<8x32xf32>
    %33 = arith.mulf %31, %32 : vector<8x32xf32>
    %cst_19 = arith.constant dense<0.000000e+00> : vector<8x16xf32>
    %34 = tpu.matmul %33, %5, %cst_19 {dimension_numbers = #tpu.dot_dimension_numbers<[1], [1], [0], [0], [0, 0, 1, 0], [], []>} : vector<8x32xf32>, vector<16x32xf32>, vector<8x16xf32> -> vector<8x16xf32>
    %35 = arith.addf %34, %15 : vector<8x16xf32>
    %cst_20 = arith.constant 0.000000e+00 : f32
    %36 = vector.broadcast %cst_20 : f32 to vector<8x16xf32>
    %37 = arith.cmpf oge, %35, %36 : vector<8x16xf32>
    %cst_21 = arith.constant 2.000000e-01 : f32
    %38 = vector.broadcast %cst_21 : f32 to vector<8x16xf32>
    %39 = arith.mulf %38, %35 : vector<8x16xf32>
    %40 = arith.select %37, %35, %39 : vector<8x16xi1>, vector<8x16xf32>
    %cst_22 = arith.constant -1.000000e+10 : f32
    %41 = vector.broadcast %cst_22 : f32 to vector<8x16xf32>
    %42 = arith.select %11, %41, %40 : vector<8x16xi1>, vector<8x16xf32>
    %cst_23 = arith.constant dense<0xFF800000> : vector<8xf32>
    %43 = vector.multi_reduction <maximumf>, %42, %cst_23 [1] : vector<8x16xf32> to vector<8xf32>
    %44 = vector.shape_cast %43 : vector<8xf32> to vector<8x1xf32>
    %45 = vector.broadcast %44 : vector<8x1xf32> to vector<8x16xf32>
    %46 = arith.subf %42, %45 : vector<8x16xf32>
    %47 = math.exp %46 : vector<8x16xf32>
    %cst_24 = arith.constant dense<0.000000e+00> : vector<8xf32>
    %48 = vector.multi_reduction <add>, %47, %cst_24 [1] : vector<8x16xf32> to vector<8xf32>
    %49 = vector.shape_cast %48 : vector<8xf32> to vector<8x1xf32>
    %50 = tpu.reciprocal %49 {approx = true} : vector<8x1xf32> -> vector<8x1xf32>
    %51 = arith.mulf %49, %50 : vector<8x1xf32>
    %cst_25 = arith.constant 2.000000e+00 : f32
    %52 = vector.broadcast %cst_25 : f32 to vector<8x1xf32>
    %53 = arith.subf %52, %51 : vector<8x1xf32>
    %54 = arith.mulf %50, %53 : vector<8x1xf32>
    %55 = vector.broadcast %54 : vector<8x1xf32> to vector<8x16xf32>
    %56 = arith.mulf %47, %55 : vector<8x16xf32>
    %cst_26 = arith.constant dense<0.000000e+00> : vector<8x32xf32>
    %57 = tpu.matmul %56, %5, %cst_26 {dimension_numbers = #tpu.dot_dimension_numbers<[1], [0], [0], [1], [0, 0, 1, 1], [], []>} : vector<8x16xf32>, vector<16x32xf32>, vector<8x32xf32> -> vector<8x32xf32>
    %58 = vector.broadcast %1 : vector<1x32xf32> to vector<16x32xf32>
    %59 = arith.mulf %5, %58 : vector<16x32xf32>
    %cst_27 = arith.constant dense<0.000000e+00> : vector<16x8xf32>
    %60 = tpu.matmul %59, %57, %cst_27 {dimension_numbers = #tpu.dot_dimension_numbers<[1], [1], [0], [0], [0, 0, 1, 0], [], []>} : vector<16x32xf32>, vector<8x32xf32>, vector<16x8xf32> -> vector<16x8xf32>
    %61 = arith.addf %60, %17 : vector<16x8xf32>
    %cst_28 = arith.constant 0.000000e+00 : f32
    %62 = vector.broadcast %cst_28 : f32 to vector<16x8xf32>
    %63 = arith.cmpf oge, %61, %62 : vector<16x8xf32>
    %cst_29 = arith.constant 2.000000e-01 : f32
    %64 = vector.broadcast %cst_29 : f32 to vector<16x8xf32>
    %65 = arith.mulf %64, %61 : vector<16x8xf32>
    %66 = arith.select %63, %61, %65 : vector<16x8xi1>, vector<16x8xf32>
    %cst_30 = arith.constant -1.000000e+10 : f32
    %67 = vector.broadcast %cst_30 : f32 to vector<16x8xf32>
    %68 = arith.select %13, %67, %66 : vector<16x8xi1>, vector<16x8xf32>
    %cst_31 = arith.constant dense<0xFF800000> : vector<16xf32>
    %69 = vector.multi_reduction <maximumf>, %68, %cst_31 [1] : vector<16x8xf32> to vector<16xf32>
    %70 = vector.shape_cast %69 : vector<16xf32> to vector<16x1xf32>
    %71 = vector.broadcast %70 : vector<16x1xf32> to vector<16x8xf32>
    %72 = arith.subf %68, %71 : vector<16x8xf32>
    %73 = math.exp %72 : vector<16x8xf32>
    %cst_32 = arith.constant dense<0.000000e+00> : vector<16xf32>
    %74 = vector.multi_reduction <add>, %73, %cst_32 [1] : vector<16x8xf32> to vector<16xf32>
    %75 = vector.shape_cast %74 : vector<16xf32> to vector<16x1xf32>
    %76 = tpu.reciprocal %75 {approx = true} : vector<16x1xf32> -> vector<16x1xf32>
    %77 = arith.mulf %75, %76 : vector<16x1xf32>
    %cst_33 = arith.constant 2.000000e+00 : f32
    %78 = vector.broadcast %cst_33 : f32 to vector<16x1xf32>
    %79 = arith.subf %78, %77 : vector<16x1xf32>
    %80 = arith.mulf %76, %79 : vector<16x1xf32>
    %81 = vector.broadcast %80 : vector<16x1xf32> to vector<16x8xf32>
    %82 = arith.mulf %73, %81 : vector<16x8xf32>
    %cst_34 = arith.constant dense<0.000000e+00> : vector<16x32xf32>
    %83 = tpu.matmul %82, %57, %cst_34 {dimension_numbers = #tpu.dot_dimension_numbers<[1], [0], [0], [1], [0, 0, 1, 1], [], []>} : vector<16x8xf32>, vector<8x32xf32>, vector<16x32xf32> -> vector<16x32xf32>
    %84 = vector.broadcast %0 : vector<1x32xf32> to vector<8x32xf32>
    %85 = arith.mulf %57, %84 : vector<8x32xf32>
    %cst_35 = arith.constant dense<0.000000e+00> : vector<8x16xf32>
    %86 = tpu.matmul %85, %83, %cst_35 {dimension_numbers = #tpu.dot_dimension_numbers<[1], [1], [0], [0], [0, 0, 1, 0], [], []>} : vector<8x32xf32>, vector<16x32xf32>, vector<8x16xf32> -> vector<8x16xf32>
    %87 = arith.addf %86, %15 : vector<8x16xf32>
    %cst_36 = arith.constant 0.000000e+00 : f32
    %88 = vector.broadcast %cst_36 : f32 to vector<8x16xf32>
    %89 = arith.cmpf oge, %87, %88 : vector<8x16xf32>
    %cst_37 = arith.constant 2.000000e-01 : f32
    %90 = vector.broadcast %cst_37 : f32 to vector<8x16xf32>
    %91 = arith.mulf %90, %87 : vector<8x16xf32>
    %92 = arith.select %89, %87, %91 : vector<8x16xi1>, vector<8x16xf32>
    %cst_38 = arith.constant -1.000000e+10 : f32
    %93 = vector.broadcast %cst_38 : f32 to vector<8x16xf32>
    %94 = arith.select %11, %93, %92 : vector<8x16xi1>, vector<8x16xf32>
    %cst_39 = arith.constant dense<0xFF800000> : vector<8xf32>
    %95 = vector.multi_reduction <maximumf>, %94, %cst_39 [1] : vector<8x16xf32> to vector<8xf32>
    %96 = vector.shape_cast %95 : vector<8xf32> to vector<8x1xf32>
    %97 = vector.broadcast %96 : vector<8x1xf32> to vector<8x16xf32>
    %98 = arith.subf %94, %97 : vector<8x16xf32>
    %99 = math.exp %98 : vector<8x16xf32>
    %cst_40 = arith.constant dense<0.000000e+00> : vector<8xf32>
    %100 = vector.multi_reduction <add>, %99, %cst_40 [1] : vector<8x16xf32> to vector<8xf32>
    %101 = vector.shape_cast %100 : vector<8xf32> to vector<8x1xf32>
    %102 = tpu.reciprocal %101 {approx = true} : vector<8x1xf32> -> vector<8x1xf32>
    %103 = arith.mulf %101, %102 : vector<8x1xf32>
    %cst_41 = arith.constant 2.000000e+00 : f32
    %104 = vector.broadcast %cst_41 : f32 to vector<8x1xf32>
    %105 = arith.subf %104, %103 : vector<8x1xf32>
    %106 = arith.mulf %102, %105 : vector<8x1xf32>
    %107 = vector.broadcast %106 : vector<8x1xf32> to vector<8x16xf32>
    %108 = arith.mulf %99, %107 : vector<8x16xf32>
    %cst_42 = arith.constant dense<0.000000e+00> : vector<8x32xf32>
    %109 = tpu.matmul %108, %83, %cst_42 {dimension_numbers = #tpu.dot_dimension_numbers<[1], [0], [0], [1], [0, 0, 1, 1], [], []>} : vector<8x16xf32>, vector<16x32xf32>, vector<8x32xf32> -> vector<8x32xf32>
    %110 = vector.broadcast %1 : vector<1x32xf32> to vector<16x32xf32>
    %111 = arith.mulf %83, %110 : vector<16x32xf32>
    %cst_43 = arith.constant dense<0.000000e+00> : vector<16x8xf32>
    %112 = tpu.matmul %111, %109, %cst_43 {dimension_numbers = #tpu.dot_dimension_numbers<[1], [1], [0], [0], [0, 0, 1, 0], [], []>} : vector<16x32xf32>, vector<8x32xf32>, vector<16x8xf32> -> vector<16x8xf32>
    %113 = arith.addf %112, %17 : vector<16x8xf32>
    %cst_44 = arith.constant 0.000000e+00 : f32
    %114 = vector.broadcast %cst_44 : f32 to vector<16x8xf32>
    %115 = arith.cmpf oge, %113, %114 : vector<16x8xf32>
    %cst_45 = arith.constant 2.000000e-01 : f32
    %116 = vector.broadcast %cst_45 : f32 to vector<16x8xf32>
    %117 = arith.mulf %116, %113 : vector<16x8xf32>
    %118 = arith.select %115, %113, %117 : vector<16x8xi1>, vector<16x8xf32>
    %cst_46 = arith.constant -1.000000e+10 : f32
    %119 = vector.broadcast %cst_46 : f32 to vector<16x8xf32>
    %120 = arith.select %13, %119, %118 : vector<16x8xi1>, vector<16x8xf32>
    %cst_47 = arith.constant dense<0xFF800000> : vector<16xf32>
    %121 = vector.multi_reduction <maximumf>, %120, %cst_47 [1] : vector<16x8xf32> to vector<16xf32>
    %122 = vector.shape_cast %121 : vector<16xf32> to vector<16x1xf32>
    %123 = vector.broadcast %122 : vector<16x1xf32> to vector<16x8xf32>
    %124 = arith.subf %120, %123 : vector<16x8xf32>
    %125 = math.exp %124 : vector<16x8xf32>
    %cst_48 = arith.constant dense<0.000000e+00> : vector<16xf32>
    %126 = vector.multi_reduction <add>, %125, %cst_48 [1] : vector<16x8xf32> to vector<16xf32>
    %127 = vector.shape_cast %126 : vector<16xf32> to vector<16x1xf32>
    %128 = tpu.reciprocal %127 {approx = true} : vector<16x1xf32> -> vector<16x1xf32>
    %129 = arith.mulf %127, %128 : vector<16x1xf32>
    %cst_49 = arith.constant 2.000000e+00 : f32
    %130 = vector.broadcast %cst_49 : f32 to vector<16x1xf32>
    %131 = arith.subf %130, %129 : vector<16x1xf32>
    %132 = arith.mulf %128, %131 : vector<16x1xf32>
    %133 = vector.broadcast %132 : vector<16x1xf32> to vector<16x8xf32>
    %134 = arith.mulf %125, %133 : vector<16x8xf32>
    %cst_50 = arith.constant dense<0.000000e+00> : vector<16x32xf32>
    %135 = tpu.matmul %134, %109, %cst_50 {dimension_numbers = #tpu.dot_dimension_numbers<[1], [0], [0], [1], [0, 0, 1, 1], [], []>} : vector<16x8xf32>, vector<8x32xf32>, vector<16x32xf32> -> vector<16x32xf32>
    %c0_51 = arith.constant 0 : index
    %c0_52 = arith.constant 0 : index
    %c0_53 = arith.constant 0 : index
    %136 = vector.load %arg7[%c0_51, %c0_52, %c0_53] : memref<1x16x32xf32, #tpu.memory_space<vmem>>, vector<1x16x32xf32>
    %137 = vector.shape_cast %136 : vector<1x16x32xf32> to vector<16x32xf32>
    %138 = vector.shape_cast %135 : vector<16x32xf32> to vector<1x16x32xf32>
    tpu.vector_store %arg7[%c0_51, %c0_52, %c0_53], %138 {strides = array<i32>} : memref<1x16x32xf32, #tpu.memory_space<vmem>>, vector<1x16x32xf32>,
    %c0_54 = arith.constant 0 : index
    %c0_55 = arith.constant 0 : index
    %c0_56 = arith.constant 0 : index
    %139 = vector.load %arg8[%c0_54, %c0_55, %c0_56] : memref<1x8x32xf32, #tpu.memory_space<vmem>>, vector<1x8x32xf32>
    %140 = vector.shape_cast %139 : vector<1x8x32xf32> to vector<8x32xf32>
    %141 = vector.shape_cast %109 : vector<8x32xf32> to vector<1x8x32xf32>
    tpu.vector_store %arg8[%c0_54, %c0_55, %c0_56], %141 {strides = array<i32>} : memref<1x8x32xf32, #tpu.memory_space<vmem>>, vector<1x8x32xf32>,
    return
  }
  func.func @transform_0(%arg0: i32) -> (i32, i32, i32) {
    %c0_i32 = arith.constant 0 : i32
    %c0_i32_0 = arith.constant 0 : i32
    %c0_i32_1 = arith.constant 0 : i32
    return %arg0, %c0_i32, %c0_i32_0 : i32, i32, i32
  }
  func.func @transform_1(%arg0: i32) -> (i32, i32, i32) {
    %c0_i32 = arith.constant 0 : i32
    %c0_i32_0 = arith.constant 0 : i32
    %c0_i32_1 = arith.constant 0 : i32
    return %arg0, %c0_i32, %c0_i32_0 : i32, i32, i32
  }
  func.func @transform_2(%arg0: i32) -> (i32, i32, i32) {
    %c0_i32 = arith.constant 0 : i32
    %c0_i32_0 = arith.constant 0 : i32
    %c0_i32_1 = arith.constant 0 : i32
    return %arg0, %c0_i32, %c0_i32_0 : i32, i32, i32
  }
  func.func @transform_3(%arg0: i32) -> (i32, i32) {
    %c0_i32 = arith.constant 0 : i32
    %c0_i32_0 = arith.constant 0 : i32
    %c0_i32_1 = arith.constant 0 : i32
    return %c0_i32, %c0_i32_0 : i32, i32
  }
  func.func @transform_4(%arg0: i32) -> (i32, i32) {
    %c0_i32 = arith.constant 0 : i32
    %c0_i32_0 = arith.constant 0 : i32
    %c0_i32_1 = arith.constant 0 : i32
    return %c0_i32, %c0_i32_0 : i32, i32
  }
  func.func @transform_5(%arg0: i32) -> i32 {
    %c0_i32 = arith.constant 0 : i32
    %c0_i32_0 = arith.constant 0 : i32
    return %c0_i32 : i32
  }
  func.func @transform_6(%arg0: i32) -> (i32, i32, i32) {
    %c0_i32 = arith.constant 0 : i32
    %c0_i32_0 = arith.constant 0 : i32
    %c0_i32_1 = arith.constant 0 : i32
    return %arg0, %c0_i32, %c0_i32_0 : i32, i32, i32
  }
  func.func @transform_7(%arg0: i32) -> (i32, i32, i32) {
    %c0_i32 = arith.constant 0 : i32
    %c0_i32_0 = arith.constant 0 : i32
    %c0_i32_1 = arith.constant 0 : i32
    return %arg0, %c0_i32, %c0_i32_0 : i32, i32, i32
  }
}

</mosaic_0001>

<bundles_post_ra>
// kernel: tpu_custom_call.1
= control target key start
LH: loop header
LB: loop body
LE: loop exit
PB: predicated region body
PF: predicated region fallthrough
CT: control target
= control target key end

     0   :  { %13 = vsyncpa [#allocation4], 0  ;;  %s2046_s0 = inlined_call_operand.vmem [shape: f32[2,16,32], index: 0, kind: input, shape index: {}]   ;;  %s2047_s1 = inlined_call_operand.vmem [shape: f32[2,8,16], index: 1, kind: input, shape index: {}]   ;;  %s2048_s2 = inlined_call_operand.vmem [shape: f32[2,16,8], index: 2, kind: input, shape index: {}]   ;;  %s2049_s3 = inlined_call_operand.vmem [shape: f32[1,32], index: 3, kind: input, shape index: {}]   ;;  %s2050_s4 = inlined_call_operand.vmem [shape: f32[1,32], index: 4, kind: input, shape index: {}]   ;;  %s2051_s5 = inlined_call_operand.vmem [shape: f32[2], index: 5, kind: input, shape index: {}]   ;;  %s2052_s6 = inlined_call_operand.hbm [shape: f32[2,16,32], index: 6, kind: output, shape index: {0}]   ;;  %s2053_s7 = inlined_call_operand.hbm [shape: f32[2,8,32], index: 7, kind: output, shape index: {1}]  }
   0x1   :  { %14 = vsyncpa [#allocation3], 0 }
   0x2   :  { %16 = vsyncpa [#allocation3 + $0x1], 0 }
   0x3   :  { %17 = vsyncpa [#allocation7], 0 }
   0x4   :  { %19 = vsyncpa [#allocation7 + $0x1], 0  ;;  %s1760_s24 = smov 0   ;;  %s1762_s25 = smov 0  }
   0x5   :  { %s1764_s26 = smov 0   ;;  %s1766_s27 = smov 0  }
   0x6 LB: > { %s1781_s28 = sadd.s32 4294967295, %s1710_s27   ;;  %s1367_s29 = sadd.s32 4294967294, %s1710_s27   ;;  %s1710_s27 = sphi %s1766_s27, %s2062_s27   ;;  %s1706_s26 = sphi %s1764_s26, %s2061_s26   ;;  %s1702_s25 = sphi %s1762_s25, %s2060_s25   ;;  %s1698_s24 = sphi %s1760_s24, %s2059_s24  }
   0x7   : > { %s1785_s30 = sadd.s32 1, %s1710_s27   ;;  %s173_s8 = sadd.s32 1, %s1706_s26 }
   0x8   : > { %s170_s9 = ssub.s32 %s1710_s27, %s1785_s30  ;;  %p183_p0 = scmp.ne.s32.totalorder %s1706_s26, %s1702_s25 }
   0x9   : > { %p171_p1 = scmp.eq.s32.totalorder %s170_s9, 0  ;;  %p184_p2 = scmp.eq.s32.totalorder %s1781_s28, 1 }
   0xa   : > { %p189_p3 = scmp.ne.s32.totalorder %s1702_s25, %s1698_s24  ;;  %p190_p4 = scmp.eq.s32.totalorder %s1367_s29, 1 }
   0xb   : > { %s1796_s10 = scalar_select %p171_p1, %s1706_s26, %s173_s8  }
   0xc   : > { %p1798_p5 = por %p184_p2, %p183_p0  ;;  %p1802_p6 = por %p190_p4, %p189_p3 }
   0xd   : > { %p1368_p7 = scmp.ge.s32.totalorder %s1710_s27, 1  ;;  %p223_p8 = scmp.lt.s32.totalorder %s1710_s27, 3 }
   0xe   : > { %p1530_p9 = scmp.eq.s32.totalorder %s1781_s28, 0  ;;  %s242_s16 = sshll.u32 %s2051_s5, 4  ;;  %s243_s16 = int_to_ptr.vmem [resolvable:$true] %s242_s16 }
   0xf   : > { %p1809_p10 = pnand %p1368_p7, %p223_p8  ;;  %s1597_s17 = scalar_lea.vmem %s243_s16, 16 }
  0x10   : > { %p1598_p13 = scmp.ne.s32.totalorder %s243_s16, %s1597_s17  ;;  %p1605_p3 = scmp.lt.s32.totalorder %s243_s16, %s243_s16 }
  0x11   : > { %p1519_p11 = pneg %p1809_p10  ;;  %p1606_p4 = scmp.lt.s32.totalorder %s1597_s17, %s1597_s17 }
  0x13   : > { %p1520_p12 = pnand %p1530_p9, %p1519_p11  ;;  %p1607_p7 = por %p1606_p4, %p1605_p3 }
  0x15   : > { %p1599_p0 = pneg %p1520_p12 }
  0x17   : > { %p1600_p1 = pnand %p1599_p0, %p1598_p13 }
  0x19   : > { %p1601_p2 = pneg %p1600_p1 }
  0x1b   : > { %p1608_p8 = pnand %p1607_p7, %p1601_p2 }
  0x1d   : > { %1611 = shalt.err (!%p1608_p8)
}
  0x1e   : > { %s1712_s18 = smov [#allocation2]   ;;  %278 = sbr.rel (%p1809_p10) target bundleno = 3306 (0xcea), region = 44 }
  0x1f   : > { %1522 = dma.vmem_to_smem (!%p1520_p12), %s243_s16, 16, %s1712_s18, [#allocation4]  }
  0x25   : > { %1685 = dma.done.wait (%p1530_p9), [#allocation4], 16  }
  0x26   : > { %1687 = vsyncadd (%p1530_p9), [#allocation4], 4294967280 }
  0x27   : > { %284 = sfence }
  0x28   : > { %p325_p11 = scmp.lt.s32.totalorder %s1781_s28, 1  ;;  %v1713_v0 = vmov 0.0|0.0   ;;  %vm1714_vm0 = vmmov 0   ;;  %v1715_v1 = vmov 0.0   ;;  %vm356_vm1 = vcmask 130048   ;;  %s341_s16 = sld [smem:[#allocation2]] }
  0x29   : > { %1494 = vmatprep.subr.bf16.mxu0 %v1713_v0  ;;  %1443 = vmatprep.mubr.msk.f32.mxu0 %vm1714_vm0, %v1715_v1  ;;  %vm447_vm2 = vcmask 261120   ;;  %v1866_v14 = vld [vmem:[%s2049_s3] ss:$0 sm:$0xff]  ;;  %vm718_vm9 = vcmask 64512   ;;  %s1406_s9 = sshll.u32 %s1781_s28, 7 }
  0x2a   : > { %s1831_s19 = scalar_select %p325_p11, %s1781_s28, 1  ;;  %1497 = vmatprep.subr.bf16.mxu1 %v1713_v0  ;;  %1450 = vmatprep.mubr.msk.f32.mxu1 %vm1714_vm0, %v1715_v1  ;;  %vm1857_vm3 = vmpackc.low %vm447_vm2, %vm447_vm2  ;;  %v1882_v36 = vld [vmem:[%s2050_s4] ss:$0 sm:$0xff] }
  0x2c   : > { %s1409_s20 = sshll.u32 %s1831_s19, 4  ;;  %s1377_s21 = sshll.u32 %s1831_s19, 3 }
  0x2d   : > { %s329_s29 = scalar_lea.vmem %s2046_s0, %s1409_s20  ;;  %s333_s13 = scalar_lea.vmem %s2047_s1, %s1377_s21 }
  0x2e   : > { %v343_v2 = vld [vmem:[%s329_s29] sm:$0xff]  ;;  %v344_v3 = vld [vmem:[%s329_s29 + $0x8] sm:$0xff]  ;;  %v351_v19 = vstv %s341_s16  ;;  %s1380_s21 = sld [smem:[#allocation2 + $0x1]]  ;;  %s338_s29 = scalar_lea.vmem %s2048_s2, %s1409_s20 }
  0x2f   : > { %v1846_v4 = vld [vmem:[%s333_s13] sm:$0xff]  ;;  %v1495_v5 = vpack.c.bf16 %v344_v3, %v343_v2  ;;  %v624_v39 = vmul.f32 %v1882_v36, %v343_v2  ;;  %v625_v42 = vmul.f32 %v1882_v36, %v344_v3  ;;  %v1906_v44 = vld [vmem:[%s338_s29 + $0x8] sm:$0xff]  ;;  %s1946_s19 = sand.u32 1, %s1702_s25   ;;  %s1974_s16 = scalar_lea.hbm %s2053_s7, %s1406_s9 }
  0x30   : > { %v357_v6 = vsel %vm356_vm1, %v1846_v4, 0.0  ;;  %v1871_v20 = vmul.f32 %v351_v19, %v1846_v4  ;;  %vm348_vm5 = vcmp.eq.f32.partialorder %v1846_v4, 0.0  ;;  %v1908_v46 = vld [vmem:[%s338_s29] sm:$0xff]  ;;  %vm350_vm7 = vcmp.eq.f32.partialorder %v1906_v44, 0.0  ;;  %s1374_s20 = sshll.u32 %s1946_s19, 3  ;;  %s1211_s17 = scalar_lea.sflag [#allocation7], %s1946_s19 }
  0x31   : > { %358 = vadd.xlane.f32.xlu0 %v357_v6  ;;  %1496 = vmatpush3.bf16.msra.mxu0 %v1495_v5  ;;  %vm349_vm10 = vcmp.eq.f32.partialorder %v1908_v46, 0.0  ;;  %s1950_s8 = scalar_lea.vmem [#allocation6], %s1374_s20 }
  0x32   : > { %1501 = vmatprep.subr.bf16.mxu0 %v1713_v0  ;;  %1500 = vmatpush3.bf16.xpose.msk.msra.mxu1 %vm1857_vm3, %v1495_v5  ;;  %s1240_s13 = sshll.u32 %s1950_s8, 4  ;;  %s1241_s13 = int_to_ptr.vmem [resolvable:$true] %s1240_s13 }
  0x33   : > { %s1612_s18 = scalar_lea.vmem %s1241_s13, 128 }
  0x34   : > { %1444 = vmatmul.mubr.msk.f32.vlgmr.msra.gmra.mrb[0].mxu0 %vm356_vm1, %v1846_v4  ;;  %v353_v45 = vstv %s1380_s21  ;;  %p1613_p9 = scmp.ne.s32.totalorder %s1241_s13, %s1612_s18  ;;  %s1716_s21 = smov [#allocation6]  }
  0x35   : > { %1503 = vmatpush3.bf16.msra.mxu0 %v1495_v5  ;;  %1457 = vmatprep.mubr.msk.f32.mxu0 %vm1714_vm0, %v1715_v1  ;;  %v1911_v47 = vmul.f32 %v353_v45, %v1906_v44  ;;  %v1914_v48 = vmul.f32 %v353_v45, %v1908_v46  ;;  %s1616_s22 = sshll.u32 %s1716_s21, 4  ;;  %s1617_s22 = int_to_ptr.vmem [resolvable:$false] %s1616_s22 }
  0x36   : > { %p1614_p10 = pnand %p1613_p9, %p1798_p5  ;;  %s1618_s23 = scalar_lea.vmem %s1617_s22, 256 }
  0x37   : > { %p1619_p13 = scmp.lt.s32.totalorder %s1241_s13, %s1617_s22  ;;  %p1620_p0 = scmp.lt.s32.totalorder %s1618_s23, %s1612_s18 }
  0x38   : > { %p1615_p12 = pneg %p1614_p10 }
  0x39   : > { %p1621_p1 = por %p1620_p0, %p1619_p13 }
  0x3b   : > { %p1622_p2 = pnand %p1621_p1, %p1615_p12 }
  0xbe   : > { %v359_v8 = vpop.xlane.xlu0 %358 }
  0xbf   : > { %vm360_vm4 = vcmp.eq.f32.partialorder %v359_v8, 0.0 }
  0xc0   : > { %v361_v9 = vsel %vm360_vm4, 1.0, %v359_v8 }
  0xc1   : > { %1571 = vrcp.f32 %v361_v9 }
  0xcb   : > { %v1572_v10 = vpop.eup %1571 }
  0xcc   : > { %v436_v11 = vmul.f32 %v1572_v10, %v361_v9 }
  0xce   : > { %v437_v12 = vsub.f32 2.0, %v436_v11 }
  0xd0   : > { %v438_v13 = vmul.f32 %v1572_v10, %v437_v12 }
 0x107   : > { %v431_v15 = vpop.f32.mrb[0].mxu0 }
 0x108   : > { %v439_v16 = vmul.f32 %v438_v13, %v431_v15  ;;  %v1445_v17 = vpop.f32.mrb[1].mxu0 }
 0x10a   : > { %v446_v18 = vmul.f32 %v1866_v14, %v439_v16 }
 0x10c   : > { %1451 = vmatmul.mubr.msk.f32.vlgmr.msra.gmra.mrb[0].mxu1 %vm447_vm2, %v446_v18 }
 0x1df   : > { %v523_v21 = vpop.f32.mrb[0].mxu1 }
 0x1e0   : > { %v524_v22 = vadd.f32 %v523_v21, %v1871_v20  ;;  %v1452_v23 = vpop.f32.mrb[1].mxu1 }
 0x1e2   : > { %v528_v24 = vmul.f32 0.2, %v524_v22  ;;  %vm527_vm6 = vcmp.ge.f32.partialorder %v524_v22, 0.0 }
 0x1e4   : > { %v529_v25 = vsel %vm527_vm6, %v524_v22, %v528_v24 }
 0x1e5   : > { %v530_v26 = vsel %vm348_vm5, -1e+10, %v529_v25 }
 0x1e6   : > { %v531_v27 = vsel %vm356_vm1, %v530_v26, -inf }
 0x1e7   : > { %532 = vmax.xlane.f32.xlu0 %v531_v27 }
 0x274   : > { %v533_v28 = vpop.xlane.xlu0 %532 }
 0x275   : > { %v534_v29 = vsub.f32 %v530_v26, %v533_v28 }
 0x277   : > { %v535_v30 = vmul.f32 1.442695, %v534_v29 }
 0x279   : > { %1573 = vpow2.f32 %v535_v30 }
 0x283   : > { %v1574_v31 = vpop.eup %1573 }
 0x284   : > { %v537_v32 = vsel %vm356_vm1, %v1574_v31, 0.0 }
 0x285   : > { %538 = vadd.xlane.f32.xlu1 %v537_v32 }
 0x312   : > { %v539_v33 = vpop.xlane.xlu1 %538 }
 0x313   : > { %1575 = vrcp.f32 %v539_v33 }
 0x31d   : > { %v1576_v34 = vpop.eup %1575 }
 0x31e   : > { %v541_v35 = vmul.f32 %v1576_v34, %v539_v33 }
 0x320   : > { %v542_v37 = vsub.f32 2.0, %v541_v35 }
 0x322   : > { %v543_v38 = vmul.f32 %v1576_v34, %v542_v37 }
 0x324   : > { %v544_v40 = vmul.f32 %v1574_v31, %v543_v38 }
 0x326   : > { %1458 = vmatmul.mubr.msk.f32.vlgmr.msra.gmra.mrb[2].mxu0 %vm356_vm1, %v544_v40 }
 0x327   : > { %1462 = vmatprep.mubr.msk.f32.mxu0 %vm447_vm2, %v624_v39 }
 0x3f9   : > { %v1887_v41 = vpop.f32.mrb[2].mxu0 }
 0x3fa   : > { %v1459_v43 = vpop.f32.mrb[3].mxu0  ;;  %1460 = vmatprep.subr.msk.mxu0 %vm447_vm2, %v1887_v41  ;;  %1465 = vmatprep.subr.mxu1 %v1887_v41  ;;  %v828_v27 = vmul.f32 %v1866_v14, %v1887_v41 }
 0x3fb   : > { %1461 = vmatpush3.xpose.msk.msra.mxu0 %vm447_vm2, %v1887_v41  ;;  %1466 = vmatpush3.msra.mxu1 %v1887_v41 }
 0x3fc   : > { %1504 = vmatprep.subr.bf16.mxu0 %v1713_v0  ;;  %1508 = vmatprep.subr.bf16.mxu1 %v1713_v0 }
 0x3fe   : > { %1463 = vmatmul.mubr.msk.f32.vlgmr.msra.gmra.mrb[4].mxu0 %vm447_vm2, %v625_v42 }
 0x3ff   : > { %1474 = vmatprep.mubr.msk.f32.mxu0 %vm1714_vm0, %v1715_v1 }
 0x4d1   : > { %v1464_v49 = vpop.f32.mrb[4].mxu0 }
 0x4d2   : > { %v707_v50 = vadd.f32 %v1464_v49, %v1911_v47  ;;  %v701_v51 = vpop.f32.mrb[5].mxu0 }
 0x4d3   : > { %v702_v52 = vadd.f32 %v701_v51, %v1914_v48 }
 0x4d4   : > { %v713_v53 = vmul.f32 0.2, %v707_v50  ;;  %vm711_vm8 = vcmp.ge.f32.partialorder %v707_v50, 0.0 }
 0x4d5   : > { %v712_v54 = vmul.f32 0.2, %v702_v52  ;;  %vm710_vm11 = vcmp.ge.f32.partialorder %v702_v52, 0.0 }
 0x4d6   : > { %v715_v55 = vsel %vm711_vm8, %v707_v50, %v713_v53 }
 0x4d7   : > { %v717_v56 = vsel %vm350_vm7, -1e+10, %v715_v55  ;;  %v714_v57 = vsel %vm710_vm11, %v702_v52, %v712_v54 }
 0x4d8   : > { %v722_v58 = vsel %vm718_vm9, %v717_v56, -inf  ;;  %v716_v59 = vsel %vm349_vm10, -1e+10, %v714_v57 }
 0x4d9   : > { %723 = vmax.xlane.f32.xlu0 %v722_v58  ;;  %v719_v60 = vsel %vm718_vm9, %v716_v59, -inf }
 0x4da   : > { %720 = vmax.xlane.f32.xlu1 %v719_v60 }
 0x566   : > { %v724_v61 = vpop.xlane.xlu0 %723 }
 0x567   : > { %v726_v62 = vsub.f32 %v717_v56, %v724_v61  ;;  %v721_v63 = vpop.xlane.xlu1 %720 }
 0x568   : > { %v725_v0 = vsub.f32 %v716_v59, %v721_v63 }
 0x569   : > { %v729_v2 = vmul.f32 1.442695, %v726_v62 }
 0x56a   : > { %v727_v3 = vmul.f32 1.442695, %v725_v0 }
 0x56b   : > { %1577 = vpow2.f32 %v729_v2 }
 0x56c   : > { %1579 = vpow2.f32 %v727_v3 }
 0x575   : > { %v1578_v5 = vpop.eup %1577 }
 0x576   : > { %v1580_v6 = vpop.eup %1579  ;;  %v734_v8 = vsel %vm718_vm9, %v1578_v5, 0.0 }
 0x577   : > { %735 = vadd.xlane.f32.xlu0 %v734_v8  ;;  %v731_v9 = vsel %vm718_vm9, %v1580_v6, 0.0 }
 0x578   : > { %732 = vadd.xlane.f32.xlu1 %v731_v9 }
 0x604   : > { %v736_v10 = vpop.xlane.xlu0 %735 }
 0x605   : > { %1581 = vrcp.f32 %v736_v10  ;;  %v733_v11 = vpop.xlane.xlu1 %732 }
 0x606   : > { %1583 = vrcp.f32 %v733_v11 }
 0x60f   : > { %v1582_v12 = vpop.eup %1581 }
 0x610   : > { %v1584_v13 = vpop.eup %1583  ;;  %v740_v15 = vmul.f32 %v1582_v12, %v736_v10 }
 0x611   : > { %v739_v16 = vmul.f32 %v1584_v13, %v733_v11 }
 0x612   : > { %v742_v17 = vsub.f32 2.0, %v740_v15 }
 0x613   : > { %v741_v18 = vsub.f32 2.0, %v739_v16 }
 0x614   : > { %v744_v19 = vmul.f32 %v1582_v12, %v742_v17 }
 0x615   : > { %v743_v21 = vmul.f32 %v1584_v13, %v741_v18 }
 0x616   : > { %v746_v23 = vmul.f32 %v1578_v5, %v744_v19 }
 0x617   : > { %v745_v22 = vmul.f32 %v1580_v6, %v743_v21 }
 0x619   : > { %1467 = vmatprep.mubr.msk.f32.mxu1 %vm718_vm9, %v745_v22 }
 0x61a   : > { %1468 = vmatmul.mubr.msk.f32.vlgmr.msra.gmra.mrb[2].mxu1 %vm718_vm9, %v746_v23 }
 0x61b   : > { %1481 = vmatprep.mubr.msk.f32.mxu1 %vm1714_vm0, %v1715_v1 }
 0x6ed   : > { %v1469_v24 = vpop.f32.mrb[2].mxu1 }
 0x6ee   : > { %v819_v25 = vpop.f32.mrb[3].mxu1  ;;  %v1000_v49 = vmul.f32 %v1469_v24, %v1882_v36 }
 0x6ef   : > { %v1505_v26 = vpack.c.bf16 %v1469_v24, %v819_v25  ;;  %v999_v42 = vmul.f32 %v1882_v36, %v819_v25 }
 0x6f1   : > { %1507 = vmatpush3.bf16.xpose.msk.msra.mxu0 %vm1857_vm3, %v1505_v26  ;;  %1510 = vmatpush3.bf16.msra.mxu1 %v1505_v26 }
 0x6f8   : > { %1475 = vmatmul.mubr.msk.f32.vlgmr.msra.gmra.mrb[6].mxu0 %vm447_vm2, %v828_v27 }
 0x7cb   : > { %v904_v28 = vpop.f32.mrb[6].mxu0 }
 0x7cc   : > { %v905_v29 = vadd.f32 %v904_v28, %v1871_v20  ;;  %v1476_v30 = vpop.f32.mrb[7].mxu0 }
 0x7ce   : > { %v909_v31 = vmul.f32 0.2, %v905_v29  ;;  %vm908_vm12 = vcmp.ge.f32.partialorder %v905_v29, 0.0 }
 0x7d0   : > { %v910_v32 = vsel %vm908_vm12, %v905_v29, %v909_v31 }
 0x7d1   : > { %v911_v1 = vsel %vm348_vm5, -1e+10, %v910_v32 }
 0x7d2   : > { %v912_v33 = vsel %vm356_vm1, %v911_v1, -inf }
 0x7d3   : > { %913 = vmax.xlane.f32.xlu1 %v912_v33 }
 0x860   : > { %v914_v7 = vpop.xlane.xlu1 %913 }
 0x861   : > { %v915_v34 = vsub.f32 %v911_v1, %v914_v7 }
 0x863   : > { %v916_v35 = vmul.f32 1.442695, %v915_v34 }
 0x865   : > { %1585 = vpow2.f32 %v916_v35 }
 0x86f   : > { %v1586_v14 = vpop.eup %1585 }
 0x870   : > { %v918_v37 = vsel %vm356_vm1, %v1586_v14, 0.0 }
 0x871   : > { %919 = vadd.xlane.f32.xlu0 %v918_v37 }
 0x8fe   : > { %v920_v20 = vpop.xlane.xlu0 %919 }
 0x8ff   : > { %1587 = vrcp.f32 %v920_v20 }
 0x909   : > { %v1588_v38 = vpop.eup %1587 }
 0x90a   : > { %v922_v39 = vmul.f32 %v1588_v38, %v920_v20 }
 0x90c   : > { %v923_v40 = vsub.f32 2.0, %v922_v39 }
 0x90e   : > { %v924_v41 = vmul.f32 %v1588_v38, %v923_v40 }
 0x910   : > { %v925_v4 = vmul.f32 %v1586_v14, %v924_v41 }
 0x912   : > { %1482 = vmatmul.mubr.msk.f32.vlgmr.msra.gmra.mrb[4].mxu1 %vm356_vm1, %v925_v4 }
 0x913   : > { %1486 = vmatprep.mubr.msk.f32.mxu1 %vm447_vm2, %v999_v42 }
 0x9e5   : > { %v995_v43 = vpop.f32.mrb[4].mxu1 }
 0x9e6   : > { %v1483_v45 = vpop.f32.mrb[5].mxu1  ;;  %1484 = vmatprep.subr.msk.mxu1 %vm447_vm2, %v995_v43  ;;  %1489 = vmatprep.subr.mxu0 %v995_v43  ;;  %1204 = vst.msk [vmem:[%s1950_s8] sm:$0xff] %vm447_vm2, %v995_v43 }
 0x9e7   : > { %1485 = vmatpush3.xpose.msk.msra.mxu1 %vm447_vm2, %v995_v43  ;;  %1490 = vmatpush3.msra.mxu0 %v995_v43 }
 0x9ea   : > { %1487 = vmatmul.mubr.msk.f32.vlgmr.msra.gmra.mrb[6].mxu1 %vm447_vm2, %v1000_v49 }
 0xabd   : > { %v1488_v50 = vpop.f32.mrb[6].mxu1 }
 0xabe   : > { %v1082_v51 = vadd.f32 %v1488_v50, %v1911_v47  ;;  %v1076_v52 = vpop.f32.mrb[7].mxu1 }
 0xabf   : > { %v1077_v53 = vadd.f32 %v1076_v52, %v1914_v48 }
 0xac0   : > { %v1088_v54 = vmul.f32 0.2, %v1082_v51  ;;  %vm1086_vm13 = vcmp.ge.f32.partialorder %v1082_v51, 0.0 }
 0xac1   : > { %v1087_v55 = vmul.f32 0.2, %v1077_v53  ;;  %vm1085_vm14 = vcmp.ge.f32.partialorder %v1077_v53, 0.0 }
 0xac2   : > { %v1090_v56 = vsel %vm1086_vm13, %v1082_v51, %v1088_v54 }
 0xac3   : > { %v1092_v57 = vsel %vm350_vm7, -1e+10, %v1090_v56  ;;  %v1089_v58 = vsel %vm1085_vm14, %v1077_v53, %v1087_v55 }
 0xac4   : > { %v1096_v59 = vsel %vm718_vm9, %v1092_v57, -inf  ;;  %v1091_v36 = vsel %vm349_vm10, -1e+10, %v1089_v58 }
 0xac5   : > { %1097 = vmax.xlane.f32.xlu0 %v1096_v59  ;;  %v1093_v47 = vsel %vm718_vm9, %v1091_v36, -inf }
 0xac6   : > { %1094 = vmax.xlane.f32.xlu1 %v1093_v47 }
 0xb52   : > { %v1098_v60 = vpop.xlane.xlu0 %1097 }
 0xb53   : > { %v1100_v48 = vsub.f32 %v1092_v57, %v1098_v60  ;;  %v1095_v61 = vpop.xlane.xlu1 %1094 }
 0xb54   : > { %v1099_v62 = vsub.f32 %v1091_v36, %v1095_v61 }
 0xb55   : > { %v1103_v63 = vmul.f32 1.442695, %v1100_v48 }
 0xb56   : > { %v1101_v0 = vmul.f32 1.442695, %v1099_v62 }
 0xb57   : > { %1589 = vpow2.f32 %v1103_v63 }
 0xb58   : > { %1591 = vpow2.f32 %v1101_v0 }
 0xb61   : > { %v1590_v44 = vpop.eup %1589 }
 0xb62   : > { %v1592_v2 = vpop.eup %1591  ;;  %v1108_v3 = vsel %vm718_vm9, %v1590_v44, 0.0 }
 0xb63   : > { %1109 = vadd.xlane.f32.xlu0 %v1108_v3  ;;  %v1105_v46 = vsel %vm718_vm9, %v1592_v2, 0.0 }
 0xb64   : > { %1106 = vadd.xlane.f32.xlu1 %v1105_v46 }
 0xbf0   : > { %v1110_v5 = vpop.xlane.xlu0 %1109 }
 0xbf1   : > { %1593 = vrcp.f32 %v1110_v5  ;;  %v1107_v6 = vpop.xlane.xlu1 %1106 }
 0xbf2   : > { %1595 = vrcp.f32 %v1107_v6 }
 0xbfb   : > { %v1594_v8 = vpop.eup %1593 }
 0xbfc   : > { %v1596_v9 = vpop.eup %1595  ;;  %v1114_v10 = vmul.f32 %v1594_v8, %v1110_v5 }
 0xbfd   : > { %v1113_v11 = vmul.f32 %v1596_v9, %v1107_v6 }
 0xbfe   : > { %v1116_v12 = vsub.f32 2.0, %v1114_v10 }
 0xbff   : > { %v1115_v13 = vsub.f32 2.0, %v1113_v11 }
 0xc00   : > { %v1118_v15 = vmul.f32 %v1594_v8, %v1116_v12 }
 0xc01   : > { %v1117_v16 = vmul.f32 %v1596_v9, %v1115_v13 }
 0xc02   : > { %v1120_v18 = vmul.f32 %v1590_v44, %v1118_v15 }
 0xc03   : > { %v1119_v17 = vmul.f32 %v1592_v2, %v1117_v16 }
 0xc05   : > { %1491 = vmatprep.mubr.msk.f32.mxu0 %vm718_vm9, %v1119_v17 }
 0xc06   : > { %1492 = vmatmul.mubr.msk.f32.vlgmr.msra.gmra.mrb[8].mxu0 %vm718_vm9, %v1120_v18 }
 0xc07   : > { %1625 = shalt.err (!%p1622_p2)
}
 0xc08   : > { %s1626_s29 = scalar_lea.hbm %s1974_s16, 128  ;;  %s1630_s9 = scalar_lea.hbm %s2053_s7, 256 }
 0xc09   : > { %p1627_p3 = scmp.ne.s32.totalorder %s1974_s16, %s1626_s29  ;;  %p1631_p8 = scmp.lt.u32.totalorder %s1974_s16, %s2053_s7 }
 0xc0a   : > { %p1632_p11 = scmp.lt.u32.totalorder %s1630_s9, %s1626_s29  ;;  %p1634_p10 = scmp.lt.u32.totalorder %s1626_s29, %s1974_s16 }
 0xc0b   : > { %p1628_p4 = pnand %p1627_p3, %p1798_p5 }
 0xc0c   : > { %p1633_p9 = por %p1632_p11, %p1631_p8 }
 0xc0d   : > { %p1629_p7 = pneg %p1628_p4 }
 0xc0e   : > { %p1635_p12 = por %p1634_p10, %p1633_p9 }
 0xc10   : > { %p1636_p13 = pnand %p1635_p12, %p1629_p7 }
 0xc12   : > { %1639 = shalt.err (!%p1636_p13)
}
 0xc13   : > { %1516 = dma.vmem_to_hbm [thread:$0]  (%p1798_p5), %s1241_s13, 128, %s1974_s16, %s1211_s17  }
 0xc14   : > { %s1373_s18 = sshll.u32 %s1946_s19, 4  ;;  %s1411_s23 = sshll.u32 %s1781_s28, 8 }
 0xc15   : > { %s317_s21 = scalar_lea.vmem [#allocation5], %s1373_s18  ;;  %s2001_s29 = scalar_lea.hbm %s2052_s6, %s1411_s23 }
 0xc16   : > { %s1224_s22 = sshll.u32 %s317_s21, 4  ;;  %s1206_s13 = scalar_lea.sflag [#allocation3], %s1946_s19  ;;  %s1996_s22 = int_to_ptr.vmem [resolvable:$true] %s1224_s22 }
 0xc17   : > { %s1640_s16 = scalar_lea.vmem %s1996_s22, 256  ;;  %s1717_s28 = smov [#allocation5]  }
 0xc18   : > { %p1641_p0 = scmp.ne.s32.totalorder %s1996_s22, %s1640_s16  ;;  %s1644_s17 = sshll.u32 %s1717_s28, 4  ;;  %s1645_s17 = int_to_ptr.vmem [resolvable:$false] %s1644_s17 }
 0xc19   : > { %s1646_s9 = scalar_lea.vmem %s1645_s17, 512  ;;  %p1647_p3 = scmp.lt.s32.totalorder %s1996_s22, %s1645_s17 }
 0xc1a   : > { %p1642_p1 = pnand %p1641_p0, %p1798_p5  ;;  %p1648_p4 = scmp.lt.s32.totalorder %s1646_s9, %s1640_s16 }
 0xc1c   : > { %p1643_p2 = pneg %p1642_p1  ;;  %p1649_p7 = por %p1648_p4, %p1647_p3 }
 0xc1e   : > { %p1650_p8 = pnand %p1649_p7, %p1643_p2 }
 0xcd9   : > { %v1493_v19 = vpop.f32.mrb[8].mxu0 }
 0xcda   : > { %1203 = vst.msk [vmem:[%s317_s21 + $0x8] sm:$0xff] %vm447_vm2, %v1493_v19  ;;  %v1193_v21 = vpop.f32.mrb[9].mxu0 }
 0xcdb   : > { %1202 = vst.msk [vmem:[%s317_s21] sm:$0xff] %vm447_vm2, %v1193_v21 }
 0xcdc   : > { %1653 = shalt.err (!%p1650_p8)
}
 0xcdd   : > { %s1654_s14 = scalar_lea.hbm %s2001_s29, 256  ;;  %s1658_s21 = scalar_lea.hbm %s2052_s6, 512 }
 0xcde   : > { %p1655_p11 = scmp.ne.s32.totalorder %s2001_s29, %s1654_s14  ;;  %p1659_p12 = scmp.lt.u32.totalorder %s2001_s29, %s2052_s6 }
 0xcdf   : > { %p1660_p13 = scmp.lt.u32.totalorder %s1658_s21, %s1654_s14  ;;  %p1662_p1 = scmp.lt.u32.totalorder %s1654_s14, %s2001_s29 }
 0xce0   : > { %p1656_p9 = pnand %p1655_p11, %p1798_p5 }
 0xce1   : > { %p1661_p0 = por %p1660_p13, %p1659_p12 }
 0xce2   : > { %p1657_p10 = pneg %p1656_p9 }
 0xce3   : > { %p1663_p2 = por %p1662_p1, %p1661_p0 }
 0xce5   : > { %p1664_p3 = pnand %p1663_p2, %p1657_p10 }
 0xce7   : > { %1667 = shalt.err (!%p1664_p3)
}
 0xce8   : > { %s1718_s8 = smov 128   ;;  %s1719_s16 = smov 8  }
 0xce9   : > { %1515 = dma.vmem_to_hbm [thread:$0]  (%p1798_p5), %s1996_s22, 256, %s2001_s29, %s1206_s13, %s1718_s8, %s1718_s8, %s1719_s16  }
 0xcea PF: > { %p1532_p4 = scmp.ge.s32.totalorder %s1710_s27, 2  ;;  %s1252_s28 = sand.u32 1, %s1698_s24  }
 0xceb   : > { %s1253_s17 = scalar_lea.sflag [#allocation3], %s1252_s28 }
 0xcec   : > { %p1524_p7 = pnand %p1532_p4, %p1802_p6 }
 0xcee   : > { %1689 = dma.done.wait (!%p1524_p7), %s1253_s17, 256  }
 0xcef   : > { %1691 = vsyncadd (!%p1524_p7), %s1253_s17, 4294967040  ;;  %s1262_s9 = scalar_lea.sflag [#allocation7], %s1252_s28 }
 0xcf0   : > { %1693 = dma.done.wait (!%p1524_p7), %s1262_s9, 128  }
 0xcf1   : > { %1695 = vsyncadd (!%p1524_p7), %s1262_s9, 4294967168  ;;  %p22_p5 = scmp.ge.s32.totalorder %s1785_s30, 4   ;;  %s2059_s24 = smov %s1702_s25 }
 0xcf2   : > { %s2060_s25 = smov %s1706_s26  ;;  %s2061_s26 = smov %s1796_s10 }
 0xcf3   : > { %s2062_s27 = smov %s1785_s30  ;;  %24 = sbr.rel (!%p22_p5) target bundleno = 6 (0x6), region = 107 }
 0xcfa   :  { %1267 = vsyncpa [#allocation3], 1 }
 0xcfb   :  { %1269 = vsyncpa [#allocation3 + $0x1], 1 }
 0xcfc   :  { %1270 = vsyncpa [#allocation7], 1 }
 0xcfd   :  { %1272 = vsyncpa [#allocation7 + $0x1], 1 }
 0xcfe   :  { %1273 = vsyncpa [#allocation4], 1 }
 0xcff   :  { %1275 = vsyncpa [#allocation4 + $0x1], 1 }

</bundles_post_ra>
